<compile_context>
chip_gen: v7x
topology: tpu7x:2x2x1
jax: 0.10.0
libtpu: 0.0.40
codegen_flags: <defaults>
</compile_context>

<pallas_src>
import functools

import jax
import jax.numpy as jnp
import numpy as np
from jax.experimental import pallas as pl
from jax.experimental.pallas import tpu as pltpu

_VMEM_LIMIT = 48 * 1024 * 1024          # safe on v7x (64 MiB physical) and v5e/v6e (128 MiB)
_TARGET_BLOCK_BYTES = 4 * 1024 * 1024   # per-block budget, f32-equivalent bytes
_FUSED_LIMIT_BYTES = 4 * 1024 * 1024    # whole-x-resident single-pass threshold (f32-equiv)
_MAX_LANE = 4096


# ----------------------------------------------------------------------------
# Tiling helpers
# ----------------------------------------------------------------------------
def _eff_itemsize(dtype):
    # In-kernel accumulation is f32, so size blocks as if every element were 4 bytes.
    return max(jnp.dtype(dtype).itemsize, 4)


def _pick_lane(n, max_lane=_MAX_LANE):
    """Widest multiple of 128 (<= max_lane) dividing the per-sample size."""
    assert n % 128 == 0
    lane = 128
    while lane * 2 <= max_lane and n % (lane * 2) == 0:
        lane *= 2
    return lane


def _pick_row_tile(rows, bytes_per_row, target_bytes=None, min_tiles=2):
    """Largest multiple-of-8 divisor of `rows` within the byte budget.

    Prefers leaving at least `min_tiles` grid steps (so v7x's second TensorCore
    gets work); falls back to the full dimension when no legal divisor exists.
    """
    if target_bytes is None:
        target_bytes = _TARGET_BLOCK_BYTES
    cap = max(8, int(target_bytes // max(1, bytes_per_row)))
    if rows >= 16:
        cap = min(cap, max(8, ((rows // min_tiles) // 8) * 8))
    d = (min(cap, rows) // 8) * 8
    while d >= 8:
        if rows % d == 0:
            return d
        d -= 8
    # TODO(synk): rows with no multiple-of-8 divisor <= cap fall back to the full
    # dimension; pathological odd shapes may exceed the VMEM budget.
    return rows


# ----------------------------------------------------------------------------
# Kernel 1a: sample-batched partial stats (whole sample per block, bs samples/step)
# ----------------------------------------------------------------------------
def _stats_kernel_batched(x_ref, sum_ref, sq_ref):
    # x_ref: (bs, RS, 128). Per-sample partial reduced over rows only (mostly VPU
    # vreg adds plus one small sublane reduce); the final 128-lane sum runs in the
    # tiny JAX epilogue. Output is a compact (bs, 128) row per stat (no inflation).
    xb = x_ref[...].astype(jnp.float32)
    sum_ref[...] = jnp.sum(xb, axis=1)
    sq_ref[...] = jnp.sum(xb * xb, axis=1)


# ----------------------------------------------------------------------------
# Kernel 1b: sample-tiled partial stats (one sample per step, rows tiled)
# ----------------------------------------------------------------------------
def _stats_kernel_tiled(x_ref, sum_ref, sq_ref, *, vreg_partial):
    # x_ref: (1, tile_r, 128) — one sample tile per grid step.
    xb = x_ref[0].astype(jnp.float32)
    if vreg_partial:
        # Free view: each (8,128) slab is exactly one vreg -> pure VPU vreg adds,
        # no cross-lane reduction tree, no broadcast fill.
        x4 = xb.reshape(-1, 8, 128)
        sum_ref[...] = jnp.sum(x4, axis=0)
        sq_ref[...] = jnp.sum(x4 * x4, axis=0)
    else:
        # Ragged fallback (tile_r not a multiple of 8): scalar partial, broadcast.
        s = jnp.sum(xb)
        q = jnp.sum(xb * xb)
        sum_ref[...] = jnp.full(sum_ref.shape, s, jnp.float32)
        sq_ref[...] = jnp.full(sq_ref.shape, q, jnp.float32)


def _compute_stats(x3):
    """x3: (B, RS, 128) native dtype -> (avg, std) f32 scalars."""
    B, RS, _ = x3.shape
    n = RS * 128
    eff = _eff_itemsize(x3.dtype)
    row_cap = max(1, _TARGET_BLOCK_BYTES // (128 * eff))

    # --- Path B: whole sample fits in a block -> batch samples per grid step. ---
    bs = 0
    if RS <= row_cap:
        sample_cap = max(1, row_cap // RS)
        d = (min(sample_cap, B // 2) // 8) * 8   # bs <= B/2 keeps >=2 grid programs
        while d >= 8:
            if B % d == 0:
                bs = d
                break
            d -= 8

    if bs >= 8:
        sum_rows, sq_rows = pl.pallas_call(
            _stats_kernel_batched,
            out_shape=(jax.ShapeDtypeStruct((B, 128), jnp.float32),
                       jax.ShapeDtypeStruct((B, 128), jnp.float32)),
            grid_spec=pltpu.PrefetchScalarGridSpec(
                num_scalar_prefetch=0,
                grid=(B // bs,),
                in_specs=[pl.BlockSpec((bs, RS, 128), lambda b: (b, 0, 0))],
                out_specs=(pl.BlockSpec((bs, 128), lambda b: (b, 0)),
                           pl.BlockSpec((bs, 128), lambda b: (b, 0)))),
            compiler_params=pltpu.CompilerParams(
                dimension_semantics=("parallel",),
                vmem_limit_bytes=_VMEM_LIMIT),
        )(x3)
        sum_b = jnp.sum(sum_rows, axis=1)                 # (B,)
        sq_b = jnp.sum(sq_rows, axis=1)                   # (B,)
    else:
        # --- Path A: one sample per step, rows tiled; vreg-shaped partials. ---
        tile_r = _pick_row_tile(RS, 128 * eff, min_tiles=1)
        T = RS // tile_r
        vreg_partial = (tile_r % 8 == 0)
        kern = functools.partial(_stats_kernel_tiled, vreg_partial=vreg_partial)
        sum_p, sq_p = pl.pallas_call(
            kern,
            out_shape=(jax.ShapeDtypeStruct((B * 8, T * 128), jnp.float32),
                       jax.ShapeDtypeStruct((B * 8, T * 128), jnp.float32)),
            grid_spec=pltpu.PrefetchScalarGridSpec(
                num_scalar_prefetch=0,
                grid=(B, T),
                in_specs=[pl.BlockSpec((1, tile_r, 128), lambda b, t: (b, t, 0))],
                out_specs=(pl.BlockSpec((8, 128), lambda b, t: (b, t)),
                           pl.BlockSpec((8, 128), lambda b, t: (b, t)))),
            compiler_params=pltpu.CompilerParams(
                dimension_semantics=("parallel", "parallel"),
                vmem_limit_bytes=_VMEM_LIMIT),
        )(x3)
        sp = sum_p.reshape(B, 8, T, 128)
        qp = sq_p.reshape(B, 8, T, 128)
        if vreg_partial:
            sum_b = sp.sum(axis=(1, 2, 3))
            sq_b = qp.sum(axis=(1, 2, 3))
        else:
            sum_b = sp[:, 0, :, 0].sum(axis=1)
            sq_b = qp[:, 0, :, 0].sum(axis=1)

    # TODO(synk): single-pass sum/sumsq variance in f32 is cancellation-prone when
    # |mean| >> std; a (count, mean, M2) combine would be more robust.
    var_b = (sq_b - sum_b * sum_b / n) / (n - 1)          # torch.var (unbiased)
    std = jnp.sqrt(jnp.mean(var_b))
    avg = jnp.sum(sum_b) / (B * n)
    return avg, std


# ----------------------------------------------------------------------------
# Kernel 2: elementwise normalize with SMEM scalars (avg, inv_std)
# ----------------------------------------------------------------------------
def _normalize_kernel(scal_ref, x_ref, o_ref):
    avg = scal_ref[0]
    inv_std = scal_ref[1]
    o_ref[...] = ((x_ref[...].astype(jnp.float32) - avg) * inv_std).astype(o_ref.dtype)


def _normalize(x2, avg, inv_std):
    """x2: (M, LANE) native dtype; avg/inv_std: f32 scalars -> normalized (M, LANE)."""
    M, lane = x2.shape
    eff = _eff_itemsize(x2.dtype)
    tile_m = _pick_row_tile(M, lane * eff, min_tiles=2)
    scal = jnp.stack([avg, inv_std]).astype(jnp.float32)   # (2,) in SMEM
    return pl.pallas_call(
        _normalize_kernel,
        out_shape=jax.ShapeDtypeStruct((M, lane), x2.dtype),
        grid_spec=pltpu.PrefetchScalarGridSpec(
            num_scalar_prefetch=0,
            grid=(M // tile_m,),
            in_specs=[pl.BlockSpec(memory_space=pltpu.MemorySpace.SMEM),
                      pl.BlockSpec((tile_m, lane), lambda i: (i, 0))],
            out_specs=pl.BlockSpec((tile_m, lane), lambda i: (i, 0))),
        compiler_params=pltpu.CompilerParams(
            dimension_semantics=("parallel",),
            vmem_limit_bytes=_VMEM_LIMIT),
    )(scal, x2)


# ----------------------------------------------------------------------------
# Kernel 3: fused single-pass (stats + normalize) for VMEM-resident inputs
# ----------------------------------------------------------------------------
def _fused_kernel(x_ref, o_ref, stat_ref):
    B, R, lane = x_ref.shape
    n = R * lane
    xb = x_ref[...].astype(jnp.float32)                    # (B, R, lane)
    row_sum = jnp.sum(xb, axis=2, keepdims=True)           # (B, R, 1)
    row_sq = jnp.sum(xb * xb, axis=2, keepdims=True)
    sum_b = jnp.sum(row_sum, axis=1, keepdims=True)        # (B, 1, 1)
    sq_b = jnp.sum(row_sq, axis=1, keepdims=True)
    var_b = (sq_b - sum_b * sum_b / n) / (n - 1)
    std = jnp.sqrt(jnp.mean(var_b))
    avg = jnp.sum(sum_b) / (B * n)
    inv_std = 1.0 / std                                    # std==0 -> inf, matches torch
    o_ref[...] = ((xb - avg) * inv_std).astype(o_ref.dtype)
    stat_ref[0, :, :] = jnp.full((8, 128), avg, jnp.float32)
    stat_ref[1, :, :] = jnp.full((8, 128), std, jnp.float32)


def _fused_forward(x3):
    """x3: (B, R, LANE) native dtype -> (y, avg, std); one HBM read + one write."""
    B, R, lane = x3.shape
    y, stats = pl.pallas_call(
        _fused_kernel,
        out_shape=(jax.ShapeDtypeStruct((B, R, lane), x3.dtype),
                   jax.ShapeDtypeStruct((2, 8, 128), jnp.float32)),
        grid_spec=pltpu.PrefetchScalarGridSpec(
            num_scalar_prefetch=0,
            grid=(1,),
            in_specs=[pl.BlockSpec((B, R, lane), lambda i: (0, 0, 0))],
            out_specs=(pl.BlockSpec((B, R, lane), lambda i: (0, 0, 0)),
                       pl.BlockSpec((2, 8, 128), lambda i: (0, 0, 0)))),
        compiler_params=pltpu.CompilerParams(
            dimension_semantics=("arbitrary",),
            vmem_limit_bytes=_VMEM_LIMIT),
    )(x3)
    return y, stats[0, 0, 0], stats[1, 0, 0]


# ----------------------------------------------------------------------------
# Forward paths (whole per-call compute runs inside one jax.jit)
# ----------------------------------------------------------------------------
def _layernorm_forward(x):
    """Returns (y, avg, std); y has x's shape/dtype, avg/std are f32 scalars."""
    orig_shape = x.shape
    B = x.shape[0]
    n = int(np.prod(x.shape[1:]))
    # TODO(synk): shapes with prod(non-batch dims) % 128 != 0 need a padded/masked path.
    assert n % 128 == 0, "prod(non-batch dims) must be a multiple of 128"
    eff = _eff_itemsize(x.dtype)
    lane = _pick_lane(n)
    R = n // lane

    if B * n * eff <= _FUSED_LIMIT_BYTES:
        y3, avg, std = _fused_forward(x.reshape(B, R, lane))
        return y3.reshape(orig_shape), avg, std

    avg, std = _compute_stats(x.reshape(B, n // 128, 128))
    inv_std = 1.0 / std                                    # exact scalar divide, once
    y2 = _normalize(x.reshape((B * n) // lane, lane), avg, inv_std)
    return y2.reshape(orig_shape), avg, std


@functools.partial(jax.jit, static_argnames=("gamma", "has_prev"))
def _unlocked_step(x, prev_std, prev_avg, *, gamma, has_prev):
    y, avg, std = _layernorm_forward(x)
    g = jnp.float32(gamma)
    new_std = jax.lax.stop_gradient((1.0 - g) * std + g * prev_std)
    if has_prev:
        new_avg = jax.lax.stop_gradient((1.0 - g) * avg + g * prev_avg)
    else:
        new_avg = jax.lax.stop_gradient((1.0 - g) * avg)
    return y, std, new_std, new_avg


@jax.jit
def _locked_step(x, avg, std):
    orig_shape = x.shape
    B = x.shape[0]
    n = int(np.prod(x.shape[1:]))
    assert n % 128 == 0, "prod(non-batch dims) must be a multiple of 128"
    lane = _pick_lane(n)
    inv_std = 1.0 / std
    y = _normalize(x.reshape((B * n) // lane, lane), avg, inv_std)
    return y.reshape(orig_shape)


# ----------------------------------------------------------------------------
# Module wrapper (keeps Static_Layernorm's running-state semantics)
# ----------------------------------------------------------------------------
class StaticLayernorm:
    """JAX/Pallas port of Static_Layernorm (no learnable parameters)."""

    def __init__(self, gamma=0.99, lock_cnt=float("inf"), ax=None):
        assert 0.0 < gamma < 1.0
        assert ax is None  # TODO(synk): ax != None (per-axis keepdim running mean) not ported
        self.std = jnp.float32(0.0)
        self.avg = None
        self.cnt = 0
        self.locked = False
        self.gamma = float(gamma)
        self.lock_cnt = lock_cnt
        self.last_std = 0.0

    def __call__(self, x):
        self.cnt += 1
        if self.cnt > self.lock_cnt:
            self.locked = True

        if self.locked:
            if self.avg is None:
                raise RuntimeError(
                    "Static_Layernorm is locked but has no running average; "
                    "run at least one unlocked forward pass first.")
            self.last_std = float("inf")
            return _locked_step(x,
                                jnp.asarray(self.avg, jnp.float32),
                                jnp.asarray(self.std, jnp.float32))

        has_prev = self.avg is not None
        prev_avg = jnp.asarray(self.avg, jnp.float32) if has_prev else jnp.float32(0.0)
        y, std, new_std, new_avg = _unlocked_step(
            x, jnp.asarray(self.std, jnp.float32), prev_avg,
            gamma=self.gamma, has_prev=has_prev)
        self.last_std = std
        self.std = new_std
        self.avg = new_avg
        return y


if __name__ == "__main__":
    key = jax.random.PRNGKey(0)
    x = jax.random.normal(key, (2, 4, 16, 16), dtype=jnp.float32)   # NCHW

    def _ref(a):
        var_ps = jnp.var(a, axis=tuple(range(1, a.ndim)), ddof=1)
        std_ref = jnp.sqrt(jnp.mean(var_ps))
        avg_ref = jnp.mean(a)
        return (a - avg_ref) / std_ref

    # 1) Module forward (fused single-pass VMEM-resident path) + EMA bookkeeping.
    layer = StaticLayernorm(gamma=0.99)
    out = jax.block_until_ready(layer(x))
    np.testing.assert_allclose(np.asarray(out), np.asarray(_ref(x)), rtol=1e-4, atol=1e-5)
    assert out.shape == x.shape and out.dtype == x.dtype

    # 2) Locked path (normalizes with running stats; lock after first call).
    layer2 = StaticLayernorm(gamma=0.99, lock_cnt=1)
    _ = jax.block_until_ready(layer2(x))     # unlocked: updates running avg/std
    y2 = jax.block_until_ready(layer2(x))    # locked: uses running avg/std
    assert y2.shape == x.shape

    # 3) Exercise the two-pass (stats + normalize) kernels at small shapes by
    #    temporarily shrinking the fusion/block budgets (module globals).
    _saved = (_FUSED_LIMIT_BYTES, _TARGET_BLOCK_BYTES)
    try:
        _FUSED_LIMIT_BYTES = 0
        _TARGET_BLOCK_BYTES = 64 * 1024
        # Sample-batched stats path (B large, whole sample per block).
        xb_ = jax.random.normal(jax.random.PRNGKey(1), (16, 8, 16, 16), jnp.float32)
        yb, _, _ = _layernorm_forward(xb_)
        yb = jax.block_until_ready(yb)
        np.testing.assert_allclose(np.asarray(yb), np.asarray(_ref(xb_)), rtol=1e-4, atol=1e-5)
        # Sample-tiled stats path (per-sample larger than a block, vreg partials).
        xt_ = jax.random.normal(jax.random.PRNGKey(2), (2, 4, 64, 128), jnp.float32)
        yt, _, _ = _layernorm_forward(xt_)
        yt = jax.block_until_ready(yt)
        np.testing.assert_allclose(np.asarray(yt), np.asarray(_ref(xt_)), rtol=1e-4, atol=1e-5)
    finally:
        _FUSED_LIMIT_BYTES, _TARGET_BLOCK_BYTES = _saved

    print("KERNEL_OK")
</pallas_src>

<mosaic_0001>
module attributes {stable_mosaic.version = 11 : i64} {
  func.func @_fused_kernel(%arg0: i32, %arg1: memref<2x1x1024xf32, #tpu.memory_space<vmem>>, %arg2: memref<2x1x1024xf32, #tpu.memory_space<vmem>>, %arg3: memref<2x8x128xf32, #tpu.memory_space<vmem>>) attributes {dimension_semantics = [#tpu.dimension_semantics<arbitrary>], iteration_bounds = array<i64: 1>, scalar_prefetch = 0 : i64, scratch_operands = 0 : i64, tpu.core_type = #tpu.core_type<tc>, window_params = [{pipeline_mode = #tpu.pipeline_mode<synchronous>, transform_indices = @transform_0, window_bounds = array<i64: 2, 1, 1024>}, {pipeline_mode = #tpu.pipeline_mode<synchronous>, transform_indices = @transform_1, window_bounds = array<i64: 2, 1, 1024>}, {pipeline_mode = #tpu.pipeline_mode<synchronous>, transform_indices = @transform_2, window_bounds = array<i64: 2, 8, 128>}]} {
    %c0 = arith.constant 0 : index
    %c0_0 = arith.constant 0 : index
    %c0_1 = arith.constant 0 : index
    %0 = vector.load %arg1[%c0, %c0_0, %c0_1] : memref<2x1x1024xf32, #tpu.memory_space<vmem>>, vector<2x1x1024xf32>
    %cst = arith.constant dense<0.000000e+00> : vector<2x1xf32>
    %1 = vector.multi_reduction <add>, %0, %cst [2] : vector<2x1x1024xf32> to vector<2x1xf32>
    %2 = vector.shape_cast %1 : vector<2x1xf32> to vector<2x1x1xf32>
    %3 = arith.mulf %0, %0 : vector<2x1x1024xf32>
    %cst_2 = arith.constant dense<0.000000e+00> : vector<2x1xf32>
    %4 = vector.multi_reduction <add>, %3, %cst_2 [2] : vector<2x1x1024xf32> to vector<2x1xf32>
    %5 = vector.shape_cast %4 : vector<2x1xf32> to vector<2x1x1xf32>
    %cst_3 = arith.constant dense<0.000000e+00> : vector<2x1xf32>
    %6 = vector.multi_reduction <add>, %2, %cst_3 [1] : vector<2x1x1xf32> to vector<2x1xf32>
    %7 = vector.shape_cast %6 : vector<2x1xf32> to vector<2x1x1xf32>
    %cst_4 = arith.constant dense<0.000000e+00> : vector<2x1xf32>
    %8 = vector.multi_reduction <add>, %5, %cst_4 [1] : vector<2x1x1xf32> to vector<2x1xf32>
    %9 = vector.shape_cast %8 : vector<2x1xf32> to vector<2x1x1xf32>
    %10 = arith.mulf %7, %7 : vector<2x1x1xf32>
    %cst_5 = arith.constant 1.024000e+03 : f32
    %11 = vector.broadcast %cst_5 : f32 to vector<2x1x1xf32>
    %12 = arith.divf %10, %11 : vector<2x1x1xf32>
    %13 = arith.subf %9, %12 : vector<2x1x1xf32>
    %cst_6 = arith.constant 1.023000e+03 : f32
    %14 = vector.broadcast %cst_6 : f32 to vector<2x1x1xf32>
    %15 = arith.divf %13, %14 : vector<2x1x1xf32>
    %16 = vector.shape_cast %15 : vector<2x1x1xf32> to vector<1x2x1x1xf32>
    %cst_7 = arith.constant dense<0.000000e+00> : vector<1xf32>
    %17 = vector.multi_reduction <add>, %16, %cst_7 [1, 2, 3] : vector<1x2x1x1xf32> to vector<1xf32>
    %18 = vector.shape_cast %17 : vector<1xf32> to vector<1x1x1x1xf32>
    %19 = vector.extract %18[0, 0, 0, 0] : f32 from vector<1x1x1x1xf32>
    %cst_8 = arith.constant 2.000000e+00 : f32
    %20 = arith.divf %19, %cst_8 : f32
    %21 = math.sqrt %20 : f32
    %22 = vector.shape_cast %7 : vector<2x1x1xf32> to vector<1x2x1x1xf32>
    %cst_9 = arith.constant dense<0.000000e+00> : vector<1xf32>
    %23 = vector.multi_reduction <add>, %22, %cst_9 [1, 2, 3] : vector<1x2x1x1xf32> to vector<1xf32>
    %24 = vector.shape_cast %23 : vector<1xf32> to vector<1x1x1x1xf32>
    %25 = vector.extract %24[0, 0, 0, 0] : f32 from vector<1x1x1x1xf32>
    %cst_10 = arith.constant 2.048000e+03 : f32
    %26 = arith.divf %25, %cst_10 : f32
    %cst_11 = arith.constant 1.000000e+00 : f32
    %27 = arith.divf %cst_11, %21 : f32
    %28 = vector.broadcast %26 : f32 to vector<2x1x1024xf32>
    %29 = arith.subf %0, %28 : vector<2x1x1024xf32>
    %30 = vector.broadcast %27 : f32 to vector<2x1x1024xf32>
    %31 = arith.mulf %29, %30 : vector<2x1x1024xf32>
    %c0_12 = arith.constant 0 : index
    %c0_13 = arith.constant 0 : index
    %c0_14 = arith.constant 0 : index
    %32 = vector.load %arg2[%c0_12, %c0_13, %c0_14] : memref<2x1x1024xf32, #tpu.memory_space<vmem>>, vector<2x1x1024xf32>
    tpu.vector_store %arg2[%c0_12, %c0_13, %c0_14], %31 {strides = array<i32>} : memref<2x1x1024xf32, #tpu.memory_space<vmem>>, vector<2x1x1024xf32>,
    %33 = vector.broadcast %26 : f32 to vector<8x128xf32>
    %c0_15 = arith.constant 0 : index
    %c0_16 = arith.constant 0 : index
    %c0_17 = arith.constant 0 : index
    %34 = vector.load %arg3[%c0_15, %c0_16, %c0_17] : memref<2x8x128xf32, #tpu.memory_space<vmem>>, vector<1x8x128xf32>
    %35 = vector.shape_cast %34 : vector<1x8x128xf32> to vector<8x128xf32>
    %36 = vector.shape_cast %33 : vector<8x128xf32> to vector<1x8x128xf32>
    tpu.vector_store %arg3[%c0_15, %c0_16, %c0_17], %36 {strides = array<i32>} : memref<2x8x128xf32, #tpu.memory_space<vmem>>, vector<1x8x128xf32>,
    %37 = vector.broadcast %21 : f32 to vector<8x128xf32>
    %c1 = arith.constant 1 : index
    %c0_18 = arith.constant 0 : index
    %c0_19 = arith.constant 0 : index
    %38 = vector.load %arg3[%c1, %c0_18, %c0_19] : memref<2x8x128xf32, #tpu.memory_space<vmem>>, vector<1x8x128xf32>
    %39 = vector.shape_cast %38 : vector<1x8x128xf32> to vector<8x128xf32>
    %40 = vector.shape_cast %37 : vector<8x128xf32> to vector<1x8x128xf32>
    tpu.vector_store %arg3[%c1, %c0_18, %c0_19], %40 {strides = array<i32>} : memref<2x8x128xf32, #tpu.memory_space<vmem>>, vector<1x8x128xf32>,
    return
  }
  func.func @transform_0(%arg0: i32) -> (i32, i32, i32) {
    %c0_i32 = arith.constant 0 : i32
    %c0_i32_0 = arith.constant 0 : i32
    %c0_i32_1 = arith.constant 0 : i32
    %c0_i32_2 = arith.constant 0 : i32
    return %c0_i32, %c0_i32_0, %c0_i32_1 : i32, i32, i32
  }
  func.func @transform_1(%arg0: i32) -> (i32, i32, i32) {
    %c0_i32 = arith.constant 0 : i32
    %c0_i32_0 = arith.constant 0 : i32
    %c0_i32_1 = arith.constant 0 : i32
    %c0_i32_2 = arith.constant 0 : i32
    return %c0_i32, %c0_i32_0, %c0_i32_1 : i32, i32, i32
  }
  func.func @transform_2(%arg0: i32) -> (i32, i32, i32) {
    %c0_i32 = arith.constant 0 : i32
    %c0_i32_0 = arith.constant 0 : i32
    %c0_i32_1 = arith.constant 0 : i32
    %c0_i32_2 = arith.constant 0 : i32
    return %c0_i32, %c0_i32_0, %c0_i32_1 : i32, i32, i32
  }
}

</mosaic_0001>

<bundles_post_ra>
// kernel: _unlocked_step.1
= control target key start
LH: loop header
LB: loop body
LE: loop exit
PB: predicated region body
PF: predicated region fallthrough
CT: control target
= control target key end

     0   :  { %v14_v0 = vlaneseq  ;;  %vm94_vm0 = vcmask 1040384   ;;  %vm261_vm1 = vcmask 0   ;;  %s490_s0 = inlined_call_operand.vmem [shape: f32[2,1,1024], index: 0, kind: input, shape index: {}]   ;;  %s491_s2 = inlined_call_operand.vmem [shape: f32[2,8,128], index: 2, kind: output, shape index: {1}]   ;;  %s492_s1 = inlined_call_operand.vmem [shape: f32[2,1,1024], index: 1, kind: output, shape index: {0}]  }
   0x1   :  { %v355_v2 = vld [vmem:[%s490_s0] sm:$0xff]  ;;  %v399_v27 = vld [vmem:[%s490_s0 + $0x8] sm:$0xff] }
   0x2   :  { %v15_v1 = vshrl.u32 %v14_v0, 7  ;;  %v129_v10 = vmul.f32 %v355_v2, %v355_v2  ;;  %v406_v31 = vmul.f32 %v399_v27, %v399_v27 }
   0x4   :  { %v357_v3 = vsub.s32 0, %v15_v1  ;;  %v359_v4 = vsub.s32 1, %v15_v1  ;;  %v361_v5 = vsub.s32 2, %v15_v1  ;;  %v363_v6 = vsub.s32 3, %v15_v1 }
   0x5   :  { %v365_v7 = vsub.s32 4, %v15_v1  ;;  %v367_v8 = vsub.s32 5, %v15_v1  ;;  %v369_v9 = vsub.s32 6, %v15_v1  ;;  %v381_v15 = vsub.s32 7, %v15_v1 }
   0x6   :  { %v17_v11 = vrot.slane %v355_v2, %v357_v3  ;;  %v21_v12 = vrot.slane %v355_v2, %v359_v4  ;;  %v25_v13 = vrot.slane %v355_v2, %v361_v5  ;;  %v29_v14 = vrot.slane %v355_v2, %v363_v6 }
   0x7   :  { %v33_v16 = vrot.slane %v355_v2, %v365_v7  ;;  %v37_v20 = vrot.slane %v355_v2, %v367_v8  ;;  %v41_v21 = vrot.slane %v355_v2, %v369_v9  ;;  %v136_v24 = vrot.slane %v129_v10, %v357_v3 }
   0x8   :  { %v95_v17 = vsel %vm94_vm0, %v17_v11, 0.0  ;;  %v96_v18 = vsel %vm94_vm0, %v21_v12, 0.0  ;;  %v98_v19 = vsel %vm94_vm0, %v25_v13, 0.0  ;;  %v100_v23 = vsel %vm94_vm0, %v29_v14, 0.0 }
   0x9   :  { %v97_v22 = vadd.f32 %v96_v18, %v95_v17  ;;  %v140_v25 = vrot.slane %v129_v10, %v359_v4  ;;  %v144_v26 = vrot.slane %v129_v10, %v361_v5  ;;  %v45_v28 = vrot.slane %v355_v2, %v381_v15 }
   0xa   :  { %v148_v30 = vrot.slane %v129_v10, %v363_v6  ;;  %v102_v32 = vsel %vm94_vm0, %v33_v16, 0.0  ;;  %v152_v33 = vrot.slane %v129_v10, %v365_v7  ;;  %v213_v34 = vsel %vm94_vm0, %v136_v24, 0.0 }
   0xb   :  { %v99_v29 = vadd.f32 %v98_v19, %v97_v22  ;;  %v214_v35 = vsel %vm94_vm0, %v140_v25, 0.0  ;;  %v156_v37 = vrot.slane %v129_v10, %v367_v8  ;;  %v216_v39 = vsel %vm94_vm0, %v144_v26, 0.0 }
   0xc   :  { %v215_v38 = vadd.f32 %v214_v35, %v213_v34  ;;  %v104_v40 = vsel %vm94_vm0, %v37_v20, 0.0  ;;  %v106_v41 = vsel %vm94_vm0, %v41_v21, 0.0  ;;  %v160_v42 = vrot.slane %v129_v10, %v369_v9 }
   0xd   :  { %v101_v36 = vadd.f32 %v100_v23, %v99_v29  ;;  %v218_v43 = vsel %vm94_vm0, %v148_v30, 0.0  ;;  %v49_v46 = vrot.slane %v399_v27, %v357_v3  ;;  %v53_v47 = vrot.slane %v399_v27, %v359_v4 }
   0xe   :  { %v217_v45 = vadd.f32 %v216_v39, %v215_v38  ;;  %v164_v48 = vrot.slane %v129_v10, %v381_v15  ;;  %v220_v49 = vsel %vm94_vm0, %v152_v33, 0.0  ;;  %v57_v50 = vrot.slane %v399_v27, %v361_v5 }
   0xf   :  { %v103_v44 = vadd.f32 %v102_v32, %v101_v36  ;;  %v61_v51 = vrot.slane %v399_v27, %v363_v6  ;;  %v108_v53 = vsel %vm94_vm0, %v45_v28, 0.0  ;;  %v222_v55 = vsel %vm94_vm0, %v156_v37, 0.0 }
  0x10   :  { %v219_v54 = vadd.f32 %v218_v43, %v217_v45  ;;  %v65_v56 = vrot.slane %v399_v27, %v365_v7  ;;  %v112_v57 = vsel %vm94_vm0, %v49_v46, 0.0  ;;  %v113_v58 = vsel %vm94_vm0, %v53_v47, 0.0 }
  0x11   :  { %v105_v52 = vadd.f32 %v104_v40, %v103_v44  ;;  %v115_v59 = vsel %vm94_vm0, %v57_v50, 0.0  ;;  %v69_v62 = vrot.slane %v399_v27, %v367_v8  ;;  %v114_v63 = vadd.f32 %v113_v58, %v112_v57 }
  0x12   :  { %v221_v61 = vadd.f32 %v220_v49, %v219_v54  ;;  %v224_v0 = vsel %vm94_vm0, %v160_v42, 0.0  ;;  %v226_v1 = vsel %vm94_vm0, %v164_v48, 0.0  ;;  %v117_v10 = vsel %vm94_vm0, %v61_v51, 0.0 }
  0x13   :  { %v107_v60 = vadd.f32 %v106_v41, %v105_v52  ;;  %v168_v11 = vrot.slane %v406_v31, %v357_v3  ;;  %v116_v14 = vadd.f32 %v115_v59, %v114_v63  ;;  %v172_v16 = vrot.slane %v406_v31, %v359_v4 }
  0x14   :  { %v223_v13 = vadd.f32 %v222_v55, %v221_v61  ;;  %v73_v17 = vrot.slane %v399_v27, %v369_v9  ;;  %v119_v18 = vsel %vm94_vm0, %v65_v56, 0.0  ;;  %v176_v19 = vrot.slane %v406_v31, %v361_v5 }
  0x15   :  { %v109_v12 = vadd.f32 %v108_v53, %v107_v60  ;;  %v180_v20 = vrot.slane %v406_v31, %v363_v6  ;;  %v77_v3 = vrot.slane %v399_v27, %v381_v15  ;;  %v118_v22 = vadd.f32 %v117_v10, %v116_v14 }
  0x16   :  { %v225_v21 = vadd.f32 %v224_v0, %v223_v13  ;;  %v121_v23 = vsel %vm94_vm0, %v69_v62, 0.0  ;;  %v184_v4 = vrot.slane %v406_v31, %v365_v7  ;;  %v230_v24 = vsel %vm94_vm0, %v168_v11, 0.0 }
  0x17   :  { %110 = vadd.xlane.f32.xlu0 %v109_v12  ;;  %v231_v25 = vsel %vm94_vm0, %v172_v16, 0.0  ;;  %v233_v5 = vsel %vm94_vm0, %v176_v19, 0.0  ;;  %v120_v28 = vadd.f32 %v119_v18, %v118_v22  ;;  %v123_v29 = vsel %vm94_vm0, %v73_v17, 0.0 }
  0x18   :  { %v227_v26 = vadd.f32 %v226_v1, %v225_v21  ;;  %v232_v6 = vadd.f32 %v231_v25, %v230_v24  ;;  %v188_v30 = vrot.slane %v406_v31, %v367_v8  ;;  %v235_v32 = vsel %vm94_vm0, %v180_v20, 0.0 }
  0x19   :  { %v122_v33 = vadd.f32 %v121_v23, %v120_v28  ;;  %v125_v7 = vsel %vm94_vm0, %v77_v3, 0.0  ;;  %v192_v35 = vrot.slane %v406_v31, %v369_v9  ;;  %v237_v36 = vsel %vm94_vm0, %v184_v4, 0.0 }
  0x1a   :  { %228 = vadd.xlane.f32.xlu1 %v227_v26  ;;  %v234_v34 = vadd.f32 %v233_v5, %v232_v6  ;;  %v196_v39 = vrot.slane %v406_v31, %v381_v15  ;;  %v239_v40 = vsel %vm94_vm0, %v188_v30, 0.0 }
  0x1b   :  { %v124_v37 = vadd.f32 %v123_v29, %v122_v33  ;;  %v241_v42 = vsel %vm94_vm0, %v192_v35, 0.0 }
  0x1c   :  { %v236_v38 = vadd.f32 %v235_v32, %v234_v34  ;;  %v243_v44 = vsel %vm94_vm0, %v196_v39, 0.0 }
  0x1d   :  { %v126_v8 = vadd.f32 %v125_v7, %v124_v37 }
  0x1e   :  { %v238_v41 = vadd.f32 %v237_v36, %v236_v38 }
  0x1f   :  { %127 = vadd.xlane.f32.xlu0 %v126_v8 }
  0x20   :  { %v240_v43 = vadd.f32 %v239_v40, %v238_v41 }
  0x22   :  { %v242_v45 = vadd.f32 %v241_v42, %v240_v43 }
  0x24   :  { %v244_v46 = vadd.f32 %v243_v44, %v242_v45 }
  0x26   :  { %245 = vadd.xlane.f32.xlu1 %v244_v46 }
  0xa4   :  { %v111_v9 = vpop.xlane.xlu0 %110 }
  0xa5   :  { %v251_v47 = vmul.f32 %v111_v9, %v111_v9  ;;  %v286_v15 = vsel %vm261_vm1, %v111_v9, 0.0 }
  0xa7   :  { %v254_v48 = vmul.f32 0.0009765625, %v251_v47  ;;  %v229_v49 = vpop.xlane.xlu1 %228 }
  0xa9   :  { %v256_v53 = vsub.f32 %v229_v49, %v254_v48 }
  0xab   :  { %v259_v56 = vmul.f32 0.0009775171, %v256_v53 }
  0xac   :  { %v128_v50 = vpop.xlane.xlu0 %127 }
  0xad   :  { %v252_v31 = vmul.f32 %v128_v50, %v128_v50  ;;  %v287_v51 = vsel %vm261_vm1, %v128_v50, 0.0  ;;  %v262_v59 = vsel %vm261_vm1, %v259_v56, 0.0 }
  0xae   :  { %v288_v52 = vadd.f32 %v287_v51, %v286_v15 }
  0xaf   :  { %v255_v54 = vmul.f32 0.0009765625, %v252_v31 }
  0xb0   :  { %289 = vadd.xlane.f32.xlu1 %v288_v52 }
  0xb3   :  { %v246_v55 = vpop.xlane.xlu1 %245 }
  0xb4   :  { %v257_v57 = vsub.f32 %v246_v55, %v255_v54 }
  0xb6   :  { %v260_v58 = vmul.f32 0.0009775171, %v257_v57 }
  0xb8   :  { %v263_v60 = vsel %vm261_vm1, %v260_v58, 0.0 }
  0xb9   :  { %v264_v61 = vadd.f32 %v263_v60, %v262_v59 }
  0xbb   :  { %265 = vadd.xlane.f32.xlu0 %v264_v61 }
 0x13d   :  { %v290_v13 = vpop.xlane.xlu1 %289 }
 0x13e   :  { %v291_v14 = vrot.slane %v290_v13, 4 }
 0x140   :  { %v292_v16 = vadd.f32 %v291_v14, %v290_v13 }
 0x142   :  { %v293_v18 = vrot.slane %v292_v16, 2 }
 0x144   :  { %v294_v19 = vadd.f32 %v293_v18, %v292_v16 }
 0x146   :  { %v295_v21 = vrot.slane %v294_v19, 1 }
 0x148   :  { %v266_v62 = vpop.xlane.xlu0 %265  ;;  %v296_v24 = vadd.f32 %v295_v21, %v294_v19 }
 0x149   :  { %v267_v63 = vrot.slane %v266_v62, 4 }
 0x14b   :  { %v268_v0 = vadd.f32 %v267_v63, %v266_v62 }
 0x14d   :  { %v269_v1 = vrot.slane %v268_v0, 2 }
 0x14f   :  { %v270_v10 = vadd.f32 %v269_v1, %v268_v0 }
 0x151   :  { %v271_v11 = vrot.slane %v270_v10, 1 }
 0x153   :  { %v272_v12 = vadd.f32 %v271_v11, %v270_v10 }
 0x155   :  { %325 = vpush %v272_v12 }
 0x186   :  { %s326_s0 = spop %325 }
 0x187   :  { %s276_s13 = smul.f32 0.5, %s326_s0 }
 0x189   :  { %v277_v17 = vstv %s276_s13 }
 0x18a   :  { %333 = vrsqrt.f32 %v277_v17  ;;  %vm280_vm2 = vcmp.eq.f32.partialorder %v277_v17, inf  ;;  %v283_v22 = vand.u32 2147483648, %v277_v17  ;;  %vm282_vm3 = vcmp.eq.f32.partialorder %v277_v17, 0.0 }
 0x194   :  { %v334_v20 = vpop.eup %333 }
 0x195   :  { %v279_v3 = vmul.f32 %v334_v20, %v277_v17 }
 0x197   :  { %v281_v23 = vsel %vm280_vm2, %v277_v17, %v279_v3 }
 0x198   :  { %v284_v4 = vsel %vm282_vm3, %v283_v22, %v281_v23 }
 0x199   :  { %327 = vpush %v284_v4 }
 0x19a   :  { %329 = vpush %v296_v24 }
 0x1ca   :  { %s328_s14 = spop %327 }
 0x1cb   :  { %v301_v25 = vstv %s328_s14  ;;  %s330_s15 = spop %329 }
 0x1cc   :  { %335 = vrcp.f32 %v301_v25  ;;  %324 = vst [vmem:[%s491_s2 + $0x8] sm:$0xff] %v301_v25  ;;  %s300_s18 = smul.f32 0.00048828125, %s330_s15 }
 0x1ce   :  { %v304_v5 = vstv %s300_s18 }
 0x1cf   :  { %312 = vst [vmem:[%s491_s2] sm:$0xff] %v304_v5  ;;  %v305_v28 = vsub.f32 %v355_v2, %v304_v5  ;;  %v306_v6 = vsub.f32 %v399_v27, %v304_v5 }
 0x1d6   :  { %v336_v26 = vpop.eup %335 }
 0x1d7   :  { %331 = vpush %v336_v26 }
 0x208   :  { %s332_s21 = spop %331 }
 0x209   :  { %v307_v29 = vstv %s332_s21 }
 0x20a   :  { %v308_v30 = vmul.f32 %v307_v29, %v305_v28  ;;  %v309_v32 = vmul.f32 %v307_v29, %v306_v6 }
 0x20c   :  { %310 = vst [vmem:[%s492_s1] sm:$0xff] %v308_v30  ;;  %311 = vst [vmem:[%s492_s1 + $0x8] sm:$0xff] %v309_v32 }

</bundles_post_ra>
